<compile_context>
chip_gen: v5e
topology: v5e:2x2
jax: 0.10.0
libtpu: 0.0.40
codegen_flags: <defaults>
</compile_context>

<pallas_src>
import math
import jax
import jax.numpy as jnp
import numpy as np
from jax.experimental import pallas as pl
from jax.experimental.pallas import tpu as pltpu

NUM_HEADS = 4
LN_EPS = 1e-12          # BertConfig.layer_norm_eps default


# ----------------------------- kernel helpers -----------------------------

def _layer_norm(x, gamma, beta):
    mean = jnp.mean(x, axis=-1, keepdims=True)
    var = jnp.mean(jnp.square(x - mean), axis=-1, keepdims=True)
    return (x - mean) * jax.lax.rsqrt(var + LN_EPS) * gamma + beta


def _gelu(x):
    # TODO(synk): HF "gelu" is the exact erf variant; using the tanh
    # approximation (EUP tanh lowers cleanly in Mosaic).  Kept in f32 (v5e).
    c = math.sqrt(2.0 / math.pi)
    return 0.5 * x * (1.0 + jnp.tanh(c * (x + 0.044715 * x * x * x)))


# ------------------------------- the kernel -------------------------------

def bert_encoder_kernel(h_ref, maskb_ref, r_ref, e_ref, f_ref,
                        wqkv_ref, wo_ref, wi_ref, wf_ref, vec_ref,
                        out_ref, h_vmem):
    l = pl.program_id(1)

    # layer 0: pull this batch element's hidden state into the VMEM carry.
    @pl.when(l == 0)
    def _():
        h_vmem[...] = h_ref[0]

    h = h_vmem[...]                  # (S, H)  layer input, VMEM-resident
    mask_big = maskb_ref[0]          # (1, NH*S) additive mask, pre-tiled per head
    r_mat = r_ref[...]               # (NH*S, S)  row-repeat selector
    e_mat = e_ref[...]               # (NH*S, NH) per-head block-sum selector
    f_mat = f_ref[...]               # (NH, H)    head -> column-block expander

    S, H = h.shape
    hd = H // NUM_HEADS
    di = wi_ref.shape[2]             # intermediate (FFN) width
    scale = 1.0 / math.sqrt(hd)

    vec = vec_ref[0]                 # (8, P) packed biases / LN params
    b_qkv = vec[0:1, :3 * H]
    b_o, ln1_g, ln1_b = vec[1:2, :H], vec[2:3, :H], vec[3:4, :H]
    b_i = vec[4:5, :di]
    b_f, ln2_g, ln2_b = vec[5:6, :H], vec[6:7, :H], vec[7:8, :H]

    # ---- fused QKV projection: one MXU push, N = 3H ------------------------
    qkv = jnp.dot(h, wqkv_ref[0], preferred_element_type=jnp.float32) + b_qkv
    q = qkv[:, 0:H] * scale          # fold 1/sqrt(hd) into q once
    k = qkv[:, H:2 * H]
    v = qkv[:, 2 * H:3 * H]

    # ---- all-head attention via block-diagonal K / V ------------------------
    # head_mask[r, c] = 1 iff row-block r//S and column-block c//hd are the
    # same head; K_bd / V_bd are block-diagonal stacks of the per-head K / V.
    head_mask = jnp.dot(e_mat, f_mat, preferred_element_type=jnp.float32)   # (NH*S, H)
    k_bd = jnp.dot(r_mat, k, preferred_element_type=jnp.float32) * head_mask
    v_bd = jnp.dot(r_mat, v, preferred_element_type=jnp.float32) * head_mask

    # scores[t, n*S + s] = q_n[t] . k_n[s]   -- one matmul for all heads
    scores = jnp.einsum('td,rd->tr', q, k_bd,
                        preferred_element_type=jnp.float32)                 # (S, NH*S)
    scores = scores + mask_big
    scores = scores - jnp.max(scores, axis=-1, keepdims=True)   # per-row shift (softmax-invariant)
    p = jnp.exp(scores)                                         # (S, NH*S) unnormalized

    # deferred softmax normalization: divide the small (S, H) context instead
    # of the (S, NH*S) probabilities, with an EUP approximate reciprocal.
    ctx_un = jnp.dot(p, v_bd, preferred_element_type=jnp.float32)       # (S, H), heads packed
    sums = jnp.dot(p, e_mat, preferred_element_type=jnp.float32)        # (S, NH) per-head denom
    denom = jnp.dot(sums, f_mat, preferred_element_type=jnp.float32)    # (S, H) expanded
    ctx = ctx_un * pl.reciprocal(denom, approx=True)

    # ---- attention output dense + residual LayerNorm ------------------------
    attn = jnp.dot(ctx, wo_ref[0], preferred_element_type=jnp.float32) + b_o
    h1 = _layer_norm(attn + h, ln1_g, ln1_b)

    # ---- feed-forward: intermediate (GELU) + output dense + residual LN -----
    ff = _gelu(jnp.dot(h1, wi_ref[0], preferred_element_type=jnp.float32) + b_i)
    mlp = jnp.dot(ff, wf_ref[0], preferred_element_type=jnp.float32) + b_f
    h2 = _layer_norm(mlp + h1, ln2_g, ln2_b)

    h_vmem[...] = h2                 # carry to the next layer (stays in VMEM)
    out_ref[0, 0] = h2               # per-layer hidden state output


# ------------------------------ the wrapper -------------------------------

def bert_encoder_custom(hidden_states, attention_mask, layer_params):
    """Mirrors BertEncoderCustom.forward: returns (all_hidden_states, mask)."""
    B, S, H = hidden_states.shape
    L = len(layer_params)
    di = layer_params[0]["wi"].shape[1]
    NH = NUM_HEADS
    hd = H // NH
    assert H % NH == 0
    P = max(3 * H, di)

    if attention_mask is None:
        attention_mask = jnp.zeros((B, 1, S), jnp.float32)

    # additive mask pre-tiled across heads: (B, 1, NH*S)
    mask_big = jnp.tile(attention_mask.astype(jnp.float32), (1, 1, NH))

    # constant selector matrices for the block-diagonal multi-head attention
    r_np = np.zeros((NH * S, S), np.float32)
    e_np = np.zeros((NH * S, NH), np.float32)
    f_np = np.zeros((NH, H), np.float32)
    for n in range(NH):
        r_np[n * S:(n + 1) * S, :] = np.eye(S, dtype=np.float32)
        e_np[n * S:(n + 1) * S, n] = 1.0
        f_np[n, n * hd:(n + 1) * hd] = 1.0
    r_mat, e_mat, f_mat = jnp.asarray(r_np), jnp.asarray(e_np), jnp.asarray(f_np)

    # ---- stack / fuse per-layer weights (plain JAX, outside the kernel) ----
    w_qkv = jnp.stack([jnp.concatenate([p["wq"], p["wk"], p["wv"]], axis=1)
                       for p in layer_params])                  # (L, H, 3H)
    w_o = jnp.stack([p["wo"] for p in layer_params])            # (L, H, H)
    w_i = jnp.stack([p["wi"] for p in layer_params])            # (L, H, I)
    w_f = jnp.stack([p["wf"] for p in layer_params])            # (L, I, H)

    def pad_row(v):
        v = v.reshape(1, -1)
        return jnp.pad(v, ((0, 0), (0, P - v.shape[1])))

    vecs = jnp.stack([
        jnp.concatenate([
            pad_row(jnp.concatenate([p["bq"], p["bk"], p["bv"]], axis=1)),
            pad_row(p["bo"]), pad_row(p["ln1_g"]), pad_row(p["ln1_b"]),
            pad_row(p["bi"]), pad_row(p["bf"]),
            pad_row(p["ln2_g"]), pad_row(p["ln2_b"]),
        ], axis=0)
        for p in layer_params
    ])                                                          # (L, 8, P)

    grid = (B, L)                    # batch parallel (v7x dual-TC), layers carried
    in_specs = [
        pl.BlockSpec((1, S, H), lambda b, l: (b, 0, 0)),            # hidden (DMA once per b)
        pl.BlockSpec((1, 1, NH * S), lambda b, l: (b, 0, 0)),       # tiled additive mask
        pl.BlockSpec((NH * S, S), lambda b, l: (0, 0)),             # R
        pl.BlockSpec((NH * S, NH), lambda b, l: (0, 0)),            # E
        pl.BlockSpec((NH, H), lambda b, l: (0, 0)),                 # F
        pl.BlockSpec((1, H, 3 * H), lambda b, l: (l, 0, 0)),        # fused Wqkv
        pl.BlockSpec((1, H, H), lambda b, l: (l, 0, 0)),            # Wo
        pl.BlockSpec((1, H, di), lambda b, l: (l, 0, 0)),           # Wi
        pl.BlockSpec((1, di, H), lambda b, l: (l, 0, 0)),           # Wf
        pl.BlockSpec((1, 8, P), lambda b, l: (l, 0, 0)),            # packed biases / LN
    ]
    out_spec = pl.BlockSpec((1, 1, S, H), lambda b, l: (l, b, 0, 0))

    out = pl.pallas_call(
        bert_encoder_kernel,
        out_shape=jax.ShapeDtypeStruct((L, B, S, H), jnp.float32),
        grid_spec=pltpu.PrefetchScalarGridSpec(
            num_scalar_prefetch=0,
            grid=grid,
            in_specs=in_specs,
            out_specs=out_spec,
            scratch_shapes=[pltpu.VMEM((S, H), jnp.float32)],   # hidden-state carry
        ),
        compiler_params=pltpu.CompilerParams(
            dimension_semantics=("parallel", "arbitrary")),
    )(hidden_states, mask_big, r_mat, e_mat, f_mat,
      w_qkv, w_o, w_i, w_f, vecs)

    all_hidden_states = tuple(out[i] for i in range(L))
    return (all_hidden_states, attention_mask)


# ------------------------- pure-JAX reference ------------------------------

def _ref_layer(h, mask, p):
    B, S, H = h.shape
    hd = H // NUM_HEADS
    q = h @ p["wq"] + p["bq"]
    k = h @ p["wk"] + p["bk"]
    v = h @ p["wv"] + p["bv"]
    q = q.reshape(B, S, NUM_HEADS, hd).transpose(0, 2, 1, 3)
    k = k.reshape(B, S, NUM_HEADS, hd).transpose(0, 2, 1, 3)
    v = v.reshape(B, S, NUM_HEADS, hd).transpose(0, 2, 1, 3)
    scores = jnp.einsum("bhqd,bhkd->bhqk", q, k) / math.sqrt(hd)
    scores = scores + mask[:, None, :, :]           # (B,1,S) -> broadcast
    probs = jax.nn.softmax(scores, axis=-1)
    ctx = jnp.einsum("bhqk,bhkd->bhqd", probs, v)
    ctx = ctx.transpose(0, 2, 1, 3).reshape(B, S, H)
    attn_out = ctx @ p["wo"] + p["bo"]

    def ln(x, g, b):
        m = jnp.mean(x, -1, keepdims=True)
        var = jnp.mean(jnp.square(x - m), -1, keepdims=True)
        return (x - m) * jax.lax.rsqrt(var + LN_EPS) * g + b

    h1 = ln(attn_out + h, p["ln1_g"], p["ln1_b"])
    ff = _gelu(h1 @ p["wi"] + p["bi"])
    out = ff @ p["wf"] + p["bf"]
    return ln(out + h1, p["ln2_g"], p["ln2_b"])


# ------------------------------ param init --------------------------------

def init_layer_params(key, H, I):
    ks = jax.random.split(key, 12)
    std = 0.02
    d = lambda k, din, dout: std * jax.random.normal(k, (din, dout), jnp.float32)
    b = lambda k, dim: std * jax.random.normal(k, (1, dim), jnp.float32)
    return dict(
        wq=d(ks[0], H, H), bq=b(ks[1], H),
        wk=d(ks[2], H, H), bk=b(ks[3], H),
        wv=d(ks[4], H, H), bv=b(ks[5], H),
        wo=d(ks[6], H, H), bo=b(ks[7], H),
        ln1_g=jnp.ones((1, H), jnp.float32), ln1_b=jnp.zeros((1, H), jnp.float32),
        wi=d(ks[8], H, I), bi=b(ks[9], I),
        wf=d(ks[10], I, H), bf=b(ks[11], H),
        ln2_g=jnp.ones((1, H), jnp.float32), ln2_b=jnp.zeros((1, H), jnp.float32),
    )


# --------------------------------- main ------------------------------------

if __name__ == "__main__":
    B, S, H, I = 2, 8, 32, 64
    NUM_TRANSFORMERS = 2

    key = jax.random.PRNGKey(0)
    k_h, k_layers = jax.random.split(key)

    hidden_states = jax.random.normal(k_h, (B, S, H), jnp.float32)

    # validity mask: batch 1 has its last 3 tokens padded -> additive extended mask
    valid = np.ones((B, S), np.float32)
    valid[1, 5:] = 0.0
    attention_mask = jnp.asarray((1.0 - valid)[:, None, :] * -10000.0)   # (B,1,S)

    layer_params = [
        init_layer_params(k, H, I)
        for k in jax.random.split(k_layers, NUM_TRANSFORMERS)
    ]

    all_hidden_states, mask_out = bert_encoder_custom(
        hidden_states, attention_mask, layer_params)
    jax.block_until_ready(all_hidden_states)

    # sanity check against pure-JAX reference
    h_ref = hidden_states
    for i, p in enumerate(layer_params):
        h_ref = _ref_layer(h_ref, attention_mask, p)
        np.testing.assert_allclose(
            np.asarray(all_hidden_states[i]), np.asarray(h_ref),
            rtol=3e-2, atol=3e-2)

    assert len(all_hidden_states) == NUM_TRANSFORMERS
    assert mask_out.shape == (B, 1, S)
    print("KERNEL_OK")
</pallas_src>

<mosaic_0001>
module attributes {stable_mosaic.version = 11 : i64} {
  func.func @bert_encoder_kernel(%arg0: i32, %arg1: i32, %arg2: memref<1x8x32xf32, #tpu.memory_space<vmem>>, %arg3: memref<1x1x32xf32, #tpu.memory_space<vmem>>, %arg4: memref<32x8xf32, #tpu.memory_space<vmem>>, %arg5: memref<32x4xf32, #tpu.memory_space<vmem>>, %arg6: memref<4x32xf32, #tpu.memory_space<vmem>>, %arg7: memref<1x32x96xf32, #tpu.memory_space<vmem>>, %arg8: memref<1x32x32xf32, #tpu.memory_space<vmem>>, %arg9: memref<1x32x64xf32, #tpu.memory_space<vmem>>, %arg10: memref<1x64x32xf32, #tpu.memory_space<vmem>>, %arg11: memref<1x8x96xf32, #tpu.memory_space<vmem>>, %arg12: memref<1x1x8x32xf32, #tpu.memory_space<vmem>>, %arg13: memref<8x32xf32, #tpu.memory_space<vmem>>) attributes {dimension_semantics = [#tpu.dimension_semantics<parallel>, #tpu.dimension_semantics<arbitrary>], iteration_bounds = array<i64: 2, 2>, scalar_prefetch = 0 : i64, scratch_operands = 1 : i64, tpu.core_type = #tpu.core_type<tc>, window_params = [{transform_indices = @transform_0, window_bounds = array<i64: 1, 8, 32>}, {transform_indices = @transform_1, window_bounds = array<i64: 1, 1, 32>}, {pipeline_mode = #tpu.pipeline_mode<synchronous>, transform_indices = @transform_2, window_bounds = array<i64: 32, 8>}, {pipeline_mode = #tpu.pipeline_mode<synchronous>, transform_indices = @transform_3, window_bounds = array<i64: 32, 4>}, {pipeline_mode = #tpu.pipeline_mode<synchronous>, transform_indices = @transform_4, window_bounds = array<i64: 4, 32>}, {transform_indices = @transform_5, window_bounds = array<i64: 1, 32, 96>}, {transform_indices = @transform_6, window_bounds = array<i64: 1, 32, 32>}, {transform_indices = @transform_7, window_bounds = array<i64: 1, 32, 64>}, {transform_indices = @transform_8, window_bounds = array<i64: 1, 64, 32>}, {transform_indices = @transform_9, window_bounds = array<i64: 1, 8, 96>}, {transform_indices = @transform_10, window_bounds = array<i64: 1, 1, 8, 32>}]} {
    %c0_i32 = arith.constant 0 : i32
    %0 = arith.cmpi eq, %arg1, %c0_i32 : i32
    %1 = arith.extui %0 : i1 to i32
    %c0_i32_0 = arith.constant 0 : i32
    %2 = arith.cmpi ne, %1, %c0_i32_0 : i32
    scf.if %2 {
      %c0_58 = arith.constant 0 : index
      %c0_59 = arith.constant 0 : index
      %c0_60 = arith.constant 0 : index
      %125 = vector.load %arg2[%c0_58, %c0_59, %c0_60] : memref<1x8x32xf32, #tpu.memory_space<vmem>>, vector<1x8x32xf32>
      %126 = vector.shape_cast %125 : vector<1x8x32xf32> to vector<8x32xf32>
      %c0_61 = arith.constant 0 : index
      %c0_62 = arith.constant 0 : index
      %127 = vector.load %arg13[%c0_61, %c0_62] : memref<8x32xf32, #tpu.memory_space<vmem>>, vector<8x32xf32>
      tpu.vector_store %arg13[%c0_61, %c0_62], %126 {strides = array<i32>} : memref<8x32xf32, #tpu.memory_space<vmem>>, vector<8x32xf32>,
    } else {
    }
    %c0 = arith.constant 0 : index
    %c0_1 = arith.constant 0 : index
    %3 = vector.load %arg13[%c0, %c0_1] : memref<8x32xf32, #tpu.memory_space<vmem>>, vector<8x32xf32>
    %c0_2 = arith.constant 0 : index
    %c0_3 = arith.constant 0 : index
    %c0_4 = arith.constant 0 : index
    %4 = vector.load %arg3[%c0_2, %c0_3, %c0_4] : memref<1x1x32xf32, #tpu.memory_space<vmem>>, vector<1x1x32xf32>
    %5 = vector.shape_cast %4 : vector<1x1x32xf32> to vector<1x32xf32>
    %c0_5 = arith.constant 0 : index
    %c0_6 = arith.constant 0 : index
    %6 = vector.load %arg4[%c0_5, %c0_6] : memref<32x8xf32, #tpu.memory_space<vmem>>, vector<32x8xf32>
    %c0_7 = arith.constant 0 : index
    %c0_8 = arith.constant 0 : index
    %7 = vector.load %arg5[%c0_7, %c0_8] : memref<32x4xf32, #tpu.memory_space<vmem>>, vector<32x4xf32>
    %c0_9 = arith.constant 0 : index
    %c0_10 = arith.constant 0 : index
    %8 = vector.load %arg6[%c0_9, %c0_10] : memref<4x32xf32, #tpu.memory_space<vmem>>, vector<4x32xf32>
    %c0_11 = arith.constant 0 : index
    %c0_12 = arith.constant 0 : index
    %c0_13 = arith.constant 0 : index
    %9 = vector.load %arg11[%c0_11, %c0_12, %c0_13] : memref<1x8x96xf32, #tpu.memory_space<vmem>>, vector<1x8x96xf32>
    %10 = vector.shape_cast %9 : vector<1x8x96xf32> to vector<8x96xf32>
    %11 = vector.extract_strided_slice %10 {offsets = [0, 0], sizes = [1, 96], strides = [1, 1]} : vector<8x96xf32> to vector<1x96xf32>
    %12 = vector.extract_strided_slice %10 {offsets = [1, 0], sizes = [1, 32], strides = [1, 1]} : vector<8x96xf32> to vector<1x32xf32>
    %13 = vector.extract_strided_slice %10 {offsets = [2, 0], sizes = [1, 32], strides = [1, 1]} : vector<8x96xf32> to vector<1x32xf32>
    %14 = vector.extract_strided_slice %10 {offsets = [3, 0], sizes = [1, 32], strides = [1, 1]} : vector<8x96xf32> to vector<1x32xf32>
    %15 = vector.extract_strided_slice %10 {offsets = [4, 0], sizes = [1, 64], strides = [1, 1]} : vector<8x96xf32> to vector<1x64xf32>
    %16 = vector.extract_strided_slice %10 {offsets = [5, 0], sizes = [1, 32], strides = [1, 1]} : vector<8x96xf32> to vector<1x32xf32>
    %17 = vector.extract_strided_slice %10 {offsets = [6, 0], sizes = [1, 32], strides = [1, 1]} : vector<8x96xf32> to vector<1x32xf32>
    %18 = vector.extract_strided_slice %10 {offsets = [7, 0], sizes = [1, 32], strides = [1, 1]} : vector<8x96xf32> to vector<1x32xf32>
    %c0_14 = arith.constant 0 : index
    %c0_15 = arith.constant 0 : index
    %c0_16 = arith.constant 0 : index
    %19 = vector.load %arg7[%c0_14, %c0_15, %c0_16] : memref<1x32x96xf32, #tpu.memory_space<vmem>>, vector<1x32x96xf32>
    %20 = vector.shape_cast %19 : vector<1x32x96xf32> to vector<32x96xf32>
    %cst = arith.constant dense<0.000000e+00> : vector<8x96xf32>
    %21 = tpu.matmul %3, %20, %cst {dimension_numbers = #tpu.dot_dimension_numbers<[1], [0], [0], [1], [0, 0, 1, 1], [], []>} : vector<8x32xf32>, vector<32x96xf32>, vector<8x96xf32> -> vector<8x96xf32>
    %22 = vector.broadcast %11 : vector<1x96xf32> to vector<8x96xf32>
    %23 = arith.addf %21, %22 : vector<8x96xf32>
    %24 = vector.extract_strided_slice %23 {offsets = [0, 0], sizes = [8, 32], strides = [1, 1]} : vector<8x96xf32> to vector<8x32xf32>
    %cst_17 = arith.constant 0.353553385 : f32
    %25 = vector.broadcast %cst_17 : f32 to vector<8x32xf32>
    %26 = arith.mulf %24, %25 : vector<8x32xf32>
    %27 = vector.extract_strided_slice %23 {offsets = [0, 32], sizes = [8, 32], strides = [1, 1]} : vector<8x96xf32> to vector<8x32xf32>
    %28 = vector.extract_strided_slice %23 {offsets = [0, 64], sizes = [8, 32], strides = [1, 1]} : vector<8x96xf32> to vector<8x32xf32>
    %cst_18 = arith.constant dense<0.000000e+00> : vector<32x32xf32>
    %29 = tpu.matmul %7, %8, %cst_18 {dimension_numbers = #tpu.dot_dimension_numbers<[1], [0], [0], [1], [0, 0, 1, 1], [], []>} : vector<32x4xf32>, vector<4x32xf32>, vector<32x32xf32> -> vector<32x32xf32>
    %cst_19 = arith.constant dense<0.000000e+00> : vector<32x32xf32>
    %30 = tpu.matmul %6, %27, %cst_19 {dimension_numbers = #tpu.dot_dimension_numbers<[1], [0], [0], [1], [0, 0, 1, 1], [], []>} : vector<32x8xf32>, vector<8x32xf32>, vector<32x32xf32> -> vector<32x32xf32>
    %31 = arith.mulf %30, %29 : vector<32x32xf32>
    %cst_20 = arith.constant dense<0.000000e+00> : vector<32x32xf32>
    %32 = tpu.matmul %6, %28, %cst_20 {dimension_numbers = #tpu.dot_dimension_numbers<[1], [0], [0], [1], [0, 0, 1, 1], [], []>} : vector<32x8xf32>, vector<8x32xf32>, vector<32x32xf32> -> vector<32x32xf32>
    %33 = arith.mulf %32, %29 : vector<32x32xf32>
    "tpu.trace_start"() <{level = 10 : i32, message = "td,rd->tr"}> : () -> ()
    %cst_21 = arith.constant dense<0.000000e+00> : vector<8x32xf32>
    %34 = tpu.matmul %26, %31, %cst_21 {dimension_numbers = #tpu.dot_dimension_numbers<[1], [1], [0], [0], [0, 0, 1, 0], [], []>} : vector<8x32xf32>, vector<32x32xf32>, vector<8x32xf32> -> vector<8x32xf32>
    "tpu.trace_stop"() : () -> ()
    %35 = vector.broadcast %5 : vector<1x32xf32> to vector<8x32xf32>
    %36 = arith.addf %34, %35 : vector<8x32xf32>
    %cst_22 = arith.constant dense<0xFF800000> : vector<8xf32>
    %37 = vector.multi_reduction <maximumf>, %36, %cst_22 [1] : vector<8x32xf32> to vector<8xf32>
    %38 = vector.shape_cast %37 : vector<8xf32> to vector<8x1xf32>
    %39 = vector.broadcast %38 : vector<8x1xf32> to vector<8x32xf32>
    %40 = arith.subf %36, %39 : vector<8x32xf32>
    %41 = math.exp %40 : vector<8x32xf32>
    %cst_23 = arith.constant dense<0.000000e+00> : vector<8x32xf32>
    %42 = tpu.matmul %41, %33, %cst_23 {dimension_numbers = #tpu.dot_dimension_numbers<[1], [0], [0], [1], [0, 0, 1, 1], [], []>} : vector<8x32xf32>, vector<32x32xf32>, vector<8x32xf32> -> vector<8x32xf32>
    %cst_24 = arith.constant dense<0.000000e+00> : vector<8x4xf32>
    %43 = tpu.matmul %41, %7, %cst_24 {dimension_numbers = #tpu.dot_dimension_numbers<[1], [0], [0], [1], [0, 0, 1, 1], [], []>} : vector<8x32xf32>, vector<32x4xf32>, vector<8x4xf32> -> vector<8x4xf32>
    %cst_25 = arith.constant dense<0.000000e+00> : vector<8x32xf32>
    %44 = tpu.matmul %43, %8, %cst_25 {dimension_numbers = #tpu.dot_dimension_numbers<[1], [0], [0], [1], [0, 0, 1, 1], [], []>} : vector<8x4xf32>, vector<4x32xf32>, vector<8x32xf32> -> vector<8x32xf32>
    %45 = tpu.reciprocal %44 {approx = true} : vector<8x32xf32> -> vector<8x32xf32>
    %46 = arith.mulf %42, %45 : vector<8x32xf32>
    %c0_26 = arith.constant 0 : index
    %c0_27 = arith.constant 0 : index
    %c0_28 = arith.constant 0 : index
    %47 = vector.load %arg8[%c0_26, %c0_27, %c0_28] : memref<1x32x32xf32, #tpu.memory_space<vmem>>, vector<1x32x32xf32>
    %48 = vector.shape_cast %47 : vector<1x32x32xf32> to vector<32x32xf32>
    %cst_29 = arith.constant dense<0.000000e+00> : vector<8x32xf32>
    %49 = tpu.matmul %46, %48, %cst_29 {dimension_numbers = #tpu.dot_dimension_numbers<[1], [0], [0], [1], [0, 0, 1, 1], [], []>} : vector<8x32xf32>, vector<32x32xf32>, vector<8x32xf32> -> vector<8x32xf32>
    %50 = vector.broadcast %12 : vector<1x32xf32> to vector<8x32xf32>
    %51 = arith.addf %49, %50 : vector<8x32xf32>
    %52 = arith.addf %51, %3 : vector<8x32xf32>
    %cst_30 = arith.constant dense<0.000000e+00> : vector<8xf32>
    %53 = vector.multi_reduction <add>, %52, %cst_30 [1] : vector<8x32xf32> to vector<8xf32>
    %54 = vector.shape_cast %53 : vector<8xf32> to vector<8x1xf32>
    %cst_31 = arith.constant 3.200000e+01 : f32
    %55 = vector.broadcast %cst_31 : f32 to vector<8x1xf32>
    %56 = arith.divf %54, %55 : vector<8x1xf32>
    %57 = vector.broadcast %56 : vector<8x1xf32> to vector<8x32xf32>
    %58 = arith.subf %52, %57 : vector<8x32xf32>
    %59 = arith.mulf %58, %58 : vector<8x32xf32>
    %cst_32 = arith.constant dense<0.000000e+00> : vector<8xf32>
    %60 = vector.multi_reduction <add>, %59, %cst_32 [1] : vector<8x32xf32> to vector<8xf32>
    %61 = vector.shape_cast %60 : vector<8xf32> to vector<8x1xf32>
    %cst_33 = arith.constant 3.200000e+01 : f32
    %62 = vector.broadcast %cst_33 : f32 to vector<8x1xf32>
    %63 = arith.divf %61, %62 : vector<8x1xf32>
    %64 = vector.broadcast %56 : vector<8x1xf32> to vector<8x32xf32>
    %65 = arith.subf %52, %64 : vector<8x32xf32>
    %cst_34 = arith.constant 9.99999996E-13 : f32
    %66 = vector.broadcast %cst_34 : f32 to vector<8x1xf32>
    %67 = arith.addf %63, %66 : vector<8x1xf32>
    %68 = math.rsqrt %67 : vector<8x1xf32>
    %69 = vector.broadcast %68 : vector<8x1xf32> to vector<8x32xf32>
    %70 = arith.mulf %65, %69 : vector<8x32xf32>
    %71 = vector.broadcast %13 : vector<1x32xf32> to vector<8x32xf32>
    %72 = arith.mulf %70, %71 : vector<8x32xf32>
    %73 = vector.broadcast %14 : vector<1x32xf32> to vector<8x32xf32>
    %74 = arith.addf %72, %73 : vector<8x32xf32>
    %c0_35 = arith.constant 0 : index
    %c0_36 = arith.constant 0 : index
    %c0_37 = arith.constant 0 : index
    %75 = vector.load %arg9[%c0_35, %c0_36, %c0_37] : memref<1x32x64xf32, #tpu.memory_space<vmem>>, vector<1x32x64xf32>
    %76 = vector.shape_cast %75 : vector<1x32x64xf32> to vector<32x64xf32>
    %cst_38 = arith.constant dense<0.000000e+00> : vector<8x64xf32>
    %77 = tpu.matmul %74, %76, %cst_38 {dimension_numbers = #tpu.dot_dimension_numbers<[1], [0], [0], [1], [0, 0, 1, 1], [], []>} : vector<8x32xf32>, vector<32x64xf32>, vector<8x64xf32> -> vector<8x64xf32>
    %78 = vector.broadcast %15 : vector<1x64xf32> to vector<8x64xf32>
    %79 = arith.addf %77, %78 : vector<8x64xf32>
    %cst_39 = arith.constant 5.000000e-01 : f32
    %80 = vector.broadcast %cst_39 : f32 to vector<8x64xf32>
    %81 = arith.mulf %80, %79 : vector<8x64xf32>
    %cst_40 = arith.constant 4.471500e-02 : f32
    %82 = vector.broadcast %cst_40 : f32 to vector<8x64xf32>
    %83 = arith.mulf %82, %79 : vector<8x64xf32>
    %84 = arith.mulf %83, %79 : vector<8x64xf32>
    %85 = arith.mulf %84, %79 : vector<8x64xf32>
    %86 = arith.addf %79, %85 : vector<8x64xf32>
    %cst_41 = arith.constant 0.797884583 : f32
    %87 = vector.broadcast %cst_41 : f32 to vector<8x64xf32>
    %88 = arith.mulf %87, %86 : vector<8x64xf32>
    %89 = math.tanh %88 : vector<8x64xf32>
    %cst_42 = arith.constant 1.000000e+00 : f32
    %90 = vector.broadcast %cst_42 : f32 to vector<8x64xf32>
    %91 = arith.addf %90, %89 : vector<8x64xf32>
    %92 = arith.mulf %81, %91 : vector<8x64xf32>
    %c0_43 = arith.constant 0 : index
    %c0_44 = arith.constant 0 : index
    %c0_45 = arith.constant 0 : index
    %93 = vector.load %arg10[%c0_43, %c0_44, %c0_45] : memref<1x64x32xf32, #tpu.memory_space<vmem>>, vector<1x64x32xf32>
    %94 = vector.shape_cast %93 : vector<1x64x32xf32> to vector<64x32xf32>
    %cst_46 = arith.constant dense<0.000000e+00> : vector<8x32xf32>
    %95 = tpu.matmul %92, %94, %cst_46 {dimension_numbers = #tpu.dot_dimension_numbers<[1], [0], [0], [1], [0, 0, 1, 1], [], []>} : vector<8x64xf32>, vector<64x32xf32>, vector<8x32xf32> -> vector<8x32xf32>
    %96 = vector.broadcast %16 : vector<1x32xf32> to vector<8x32xf32>
    %97 = arith.addf %95, %96 : vector<8x32xf32>
    %98 = arith.addf %97, %74 : vector<8x32xf32>
    %cst_47 = arith.constant dense<0.000000e+00> : vector<8xf32>
    %99 = vector.multi_reduction <add>, %98, %cst_47 [1] : vector<8x32xf32> to vector<8xf32>
    %100 = vector.shape_cast %99 : vector<8xf32> to vector<8x1xf32>
    %cst_48 = arith.constant 3.200000e+01 : f32
    %101 = vector.broadcast %cst_48 : f32 to vector<8x1xf32>
    %102 = arith.divf %100, %101 : vector<8x1xf32>
    %103 = vector.broadcast %102 : vector<8x1xf32> to vector<8x32xf32>
    %104 = arith.subf %98, %103 : vector<8x32xf32>
    %105 = arith.mulf %104, %104 : vector<8x32xf32>
    %cst_49 = arith.constant dense<0.000000e+00> : vector<8xf32>
    %106 = vector.multi_reduction <add>, %105, %cst_49 [1] : vector<8x32xf32> to vector<8xf32>
    %107 = vector.shape_cast %106 : vector<8xf32> to vector<8x1xf32>
    %cst_50 = arith.constant 3.200000e+01 : f32
    %108 = vector.broadcast %cst_50 : f32 to vector<8x1xf32>
    %109 = arith.divf %107, %108 : vector<8x1xf32>
    %110 = vector.broadcast %102 : vector<8x1xf32> to vector<8x32xf32>
    %111 = arith.subf %98, %110 : vector<8x32xf32>
    %cst_51 = arith.constant 9.99999996E-13 : f32
    %112 = vector.broadcast %cst_51 : f32 to vector<8x1xf32>
    %113 = arith.addf %109, %112 : vector<8x1xf32>
    %114 = math.rsqrt %113 : vector<8x1xf32>
    %115 = vector.broadcast %114 : vector<8x1xf32> to vector<8x32xf32>
    %116 = arith.mulf %111, %115 : vector<8x32xf32>
    %117 = vector.broadcast %17 : vector<1x32xf32> to vector<8x32xf32>
    %118 = arith.mulf %116, %117 : vector<8x32xf32>
    %119 = vector.broadcast %18 : vector<1x32xf32> to vector<8x32xf32>
    %120 = arith.addf %118, %119 : vector<8x32xf32>
    %c0_52 = arith.constant 0 : index
    %c0_53 = arith.constant 0 : index
    %121 = vector.load %arg13[%c0_52, %c0_53] : memref<8x32xf32, #tpu.memory_space<vmem>>, vector<8x32xf32>
    tpu.vector_store %arg13[%c0_52, %c0_53], %120 {strides = array<i32>} : memref<8x32xf32, #tpu.memory_space<vmem>>, vector<8x32xf32>,
    %c0_54 = arith.constant 0 : index
    %c0_55 = arith.constant 0 : index
    %c0_56 = arith.constant 0 : index
    %c0_57 = arith.constant 0 : index
    %122 = vector.load %arg12[%c0_54, %c0_55, %c0_56, %c0_57] : memref<1x1x8x32xf32, #tpu.memory_space<vmem>>, vector<1x1x8x32xf32>
    %123 = vector.shape_cast %122 : vector<1x1x8x32xf32> to vector<8x32xf32>
    %124 = vector.shape_cast %120 : vector<8x32xf32> to vector<1x1x8x32xf32>
    tpu.vector_store %arg12[%c0_54, %c0_55, %c0_56, %c0_57], %124 {strides = array<i32>} : memref<1x1x8x32xf32, #tpu.memory_space<vmem>>, vector<1x1x8x32xf32>,
    return
  }
  func.func @transform_0(%arg0: i32, %arg1: i32) -> (i32, i32, i32) {
    %c0_i32 = arith.constant 0 : i32
    %c0_i32_0 = arith.constant 0 : i32
    %c0_i32_1 = arith.constant 0 : i32
    return %arg0, %c0_i32, %c0_i32_0 : i32, i32, i32
  }
  func.func @transform_1(%arg0: i32, %arg1: i32) -> (i32, i32, i32) {
    %c0_i32 = arith.constant 0 : i32
    %c0_i32_0 = arith.constant 0 : i32
    %c0_i32_1 = arith.constant 0 : i32
    return %arg0, %c0_i32, %c0_i32_0 : i32, i32, i32
  }
  func.func @transform_2(%arg0: i32, %arg1: i32) -> (i32, i32) {
    %c0_i32 = arith.constant 0 : i32
    %c0_i32_0 = arith.constant 0 : i32
    %c0_i32_1 = arith.constant 0 : i32
    return %c0_i32, %c0_i32_0 : i32, i32
  }
  func.func @transform_3(%arg0: i32, %arg1: i32) -> (i32, i32) {
    %c0_i32 = arith.constant 0 : i32
    %c0_i32_0 = arith.constant 0 : i32
    %c0_i32_1 = arith.constant 0 : i32
    return %c0_i32, %c0_i32_0 : i32, i32
  }
  func.func @transform_4(%arg0: i32, %arg1: i32) -> (i32, i32) {
    %c0_i32 = arith.constant 0 : i32
    %c0_i32_0 = arith.constant 0 : i32
    %c0_i32_1 = arith.constant 0 : i32
    return %c0_i32, %c0_i32_0 : i32, i32
  }
  func.func @transform_5(%arg0: i32, %arg1: i32) -> (i32, i32, i32) {
    %c0_i32 = arith.constant 0 : i32
    %c0_i32_0 = arith.constant 0 : i32
    %c0_i32_1 = arith.constant 0 : i32
    return %arg1, %c0_i32, %c0_i32_0 : i32, i32, i32
  }
  func.func @transform_6(%arg0: i32, %arg1: i32) -> (i32, i32, i32) {
    %c0_i32 = arith.constant 0 : i32
    %c0_i32_0 = arith.constant 0 : i32
    %c0_i32_1 = arith.constant 0 : i32
    return %arg1, %c0_i32, %c0_i32_0 : i32, i32, i32
  }
  func.func @transform_7(%arg0: i32, %arg1: i32) -> (i32, i32, i32) {
    %c0_i32 = arith.constant 0 : i32
    %c0_i32_0 = arith.constant 0 : i32
    %c0_i32_1 = arith.constant 0 : i32
    return %arg1, %c0_i32, %c0_i32_0 : i32, i32, i32
  }
  func.func @transform_8(%arg0: i32, %arg1: i32) -> (i32, i32, i32) {
    %c0_i32 = arith.constant 0 : i32
    %c0_i32_0 = arith.constant 0 : i32
    %c0_i32_1 = arith.constant 0 : i32
    return %arg1, %c0_i32, %c0_i32_0 : i32, i32, i32
  }
  func.func @transform_9(%arg0: i32, %arg1: i32) -> (i32, i32, i32) {
    %c0_i32 = arith.constant 0 : i32
    %c0_i32_0 = arith.constant 0 : i32
    %c0_i32_1 = arith.constant 0 : i32
    return %arg1, %c0_i32, %c0_i32_0 : i32, i32, i32
  }
  func.func @transform_10(%arg0: i32, %arg1: i32) -> (i32, i32, i32, i32) {
    %c0_i32 = arith.constant 0 : i32
    %c0_i32_0 = arith.constant 0 : i32
    %c0_i32_1 = arith.constant 0 : i32
    return %arg1, %arg0, %c0_i32, %c0_i32_0 : i32, i32, i32, i32
  }
}

</mosaic_0001>

<bundles_post_ra>
// kernel: tpu_custom_call.1
= control target key start
LH: loop header
LB: loop body
LE: loop exit
PB: predicated region body
PF: predicated region fallthrough
CT: control target
= control target key end

     0   :  { %s1924_s0 = inlined_call_operand.vmem [shape: f32[2,8,32], index: 0, kind: input, shape index: {}]   ;;  %s1925_s1 = inlined_call_operand.vmem [shape: f32[2,1,32], index: 1, kind: input, shape index: {}]   ;;  %s1926_s2 = inlined_call_operand.vmem [shape: f32[32,8], index: 2, kind: input, shape index: {}]   ;;  %s1927_s3 = inlined_call_operand.vmem [shape: f32[32,4], index: 3, kind: input, shape index: {}]   ;;  %s1928_s4 = inlined_call_operand.hbm [shape: f32[4,32], index: 4, kind: input, shape index: {}]   ;;  %s1929_s5 = inlined_call_operand.vmem [shape: f32[2,32,96], index: 5, kind: input, shape index: {}]   ;;  %s1930_s6 = inlined_call_operand.vmem [shape: f32[2,32,32], index: 6, kind: input, shape index: {}]   ;;  %s1931_s7 = inlined_call_operand.vmem [shape: f32[2,32,64], index: 7, kind: input, shape index: {}]   ;;  %s1932_s8 = inlined_call_operand.vmem [shape: f32[2,64,32], index: 8, kind: input, shape index: {}]   ;;  %s1933_s9 = inlined_call_operand.hbm [shape: f32[2,8,96], index: 9, kind: input, shape index: {}]   ;;  %s1934_s10 = inlined_call_operand.hbm [shape: f32[2,2,8,32], index: 10, kind: output, shape index: {}]  }
   0x1   :  { %1949 = sst [smem:[#allocation23_spill]] %s1924_s0 }
   0x2   :  { %1950 = sst [smem:[#allocation24_spill]] %s1925_s1 }
   0x3   :  { %1951 = sst [smem:[#allocation25_spill]] %s1926_s2 }
   0x4   :  { %1952 = sst [smem:[#allocation26_spill]] %s1927_s3 }
   0x5   :  { %1953 = sst [smem:[#allocation27_spill]] %s1928_s4 }
   0x6   :  { %1954 = sst [smem:[#allocation28_spill]] %s1929_s5 }
   0x7   :  { %1955 = sst [smem:[#allocation29_spill]] %s1930_s6 }
   0x8   :  { %1956 = sst [smem:[#allocation30_spill]] %s1931_s7 }
   0x9   :  { %1957 = sst [smem:[#allocation31_spill]] %s1932_s8 }
   0xa   :  { %1958 = sst [smem:[#allocation32_spill]] %s1933_s9 }
   0xb   :  { %1959 = sst [smem:[#allocation33_spill]] %s1934_s10 }
   0xc   :  { %15 = vsyncpa [#allocation4], 0 }
   0xd   :  { %16 = vsyncpa [#allocation7], 0 }
   0xe   :  { %18 = vsyncpa [#allocation7 + $0x1], 0 }
   0xf   :  { %19 = vsyncpa [#allocation5], 0 }
  0x10   :  { %21 = vsyncpa [#allocation5 + $0x1], 0  ;;  %s1586_s13 = smov 0   ;;  %s1588_s14 = smov 0  }
  0x11   :  { %s1590_s15 = smov 0   ;;  %s1592_s16 = smov 0  }
  0x12   :  { %s1594_s17 = smov 0   ;;  %s1596_s18 = smov 0  }
  0x13   :  { %s1598_s19 = smov 0   ;;  %s1600_s20 = smov 0  }
  0x14   :  { %s1602_s21 = smov 0   ;;  %s1604_s22 = smov 0  }
  0x15   :  { %s1606_s23 = smov 0  }
  0x16 LB: > { %1960 = sst [smem:[#allocation12_spill]] %s1485_s13  ;;  %s1153_s24 = sadd.s32 4294967295, %s1525_s23   ;;  %s1525_s23 = sphi %s1606_s23, %s27_s23   ;;  %s1521_s22 = sphi %s1604_s22, %s2007_s22   ;;  %s1517_s21 = sphi %s1602_s21, %s2001_s21   ;;  %s1513_s20 = sphi %s1600_s20, %s2000_s20   ;;  %s1509_s19 = sphi %s1598_s19, %s1999_s19   ;;  %s1505_s18 = sphi %s1596_s18, %s2006_s18   ;;  %s1501_s17 = sphi %s1594_s17, %s1997_s17   ;;  %s1497_s16 = sphi %s1592_s16, %s1996_s16   ;;  %s1493_s15 = sphi %s1590_s15, %s2005_s15   ;;  %s1489_s14 = sphi %s1588_s14, %s2004_s14   ;;  %s1485_s13 = sphi %s1586_s13, %s2003_s13  }
  0x17   : > { %1961 = sst [smem:[#allocation13_spill]] %s1501_s17  ;;  %s1154_s25 = sadd.s32 4294967294, %s1525_s23  }
  0x18   : > { %1962 = sst [smem:[#allocation14_spill]] %s1505_s18  ;;  %p278_p0 = scmp.ne.s32.totalorder %s1501_s17, %s1497_s16 }
  0x19   : > { %1963 = sst [smem:[#allocation15_spill]] %s1517_s21  ;;  %p1642_p1 = scmp.eq.s32.totalorder %s1153_s24, 0 }
  0x1a   : > { %1964 = sst [smem:[#allocation16_spill]] %s1521_s22  ;;  %p303_p2 = scmp.ne.s32.totalorder %s1493_s15, %s1489_s14 }
  0x1b   : > { %p304_p3 = scmp.eq.s32.totalorder %s1153_s24, 3  ;;  %p1650_p4 = por %p1642_p1, %p278_p0 }
  0x1c   : > { %p309_p5 = scmp.ne.s32.totalorder %s1489_s14, %s1485_s13  ;;  %p310_p7 = scmp.eq.s32.totalorder %s1154_s25, 3 }
  0x1d   : > { %p1656_p6 = por %p304_p3, %p303_p2  ;;  %p1155_p8 = scmp.ge.s32.totalorder %s1525_s23, 1 }
  0x1e   : > { %p317_p9 = scmp.lt.s32.totalorder %s1525_s23, 5  ;;  %p1662_p10 = por %p310_p7, %p309_p5 }
  0x1f   : > { %s1967_s28 = scalar_select %p1656_p6, 1, 0 }
  0x20   : > { %s1969_s29 = scalar_select %p1662_p10, 1, 0 }
  0x21   : > { %1968 = sst [smem:[#allocation17_spill]] %s1967_s28  ;;  %p1666_p11 = pnand %p1155_p8, %p317_p9 }
  0x22   : > { %1970 = sst [smem:[#allocation18_spill]] %s1969_s29  ;;  %s1527_s24 = smov [#allocation3]  }
  0x23   : > { %s1972_s4 = sld [smem:[#allocation27_spill]]  ;;  %p1218_p12 = pneg %p1666_p11 }
  0x24   : > { %s337_s25 = sshll.u32 %s1527_s24, 4  ;;  %s36_s29 = sadd.s32 1, %s1517_s21  ;;  %s338_s25 = int_to_ptr.vmem [resolvable:$true] %s337_s25 }
  0x25   : > { %p1219_p13 = pnand %p1218_p12, %p1642_p1  ;;  %s39_s13 = sadd.s32 1, %s1521_s22 }
  0x26   : > { %p37_p0 = scmp.ge.s32.totalorder %s36_s29, 2  ;;  %s265_s11 = sadd.s32 1, %s1505_s18 }
  0x27   : > { %p272_p2 = scmp.ne.s32.totalorder %s1505_s18, %s1501_s17  ;;  %p273_p3 = scmp.eq.s32.totalorder %s1525_s23, 0 }
  0x28   : > { %s2009_s29 = smov (%p37_p0, %s36_s29), 0  ;;  %s2011_s13 = smov (!%p37_p0, %s39_s13), %s1521_s22 }
  0x29   : > { %s335_s16 = sshll.u32 %s1972_s4, 4  ;;  %1973 = sst [smem:[#allocation19_spill]] %s2009_s29  ;;  %s336_s16 = int_to_ptr.hbm [resolvable:$true] %s335_s16 }
  0x2a   : > { %1221 = dma.hbm_to_vmem [thread:$0]  (!%p1219_p13), %s336_s16, 64, %s338_s25, [#allocation4]  }
  0x2b   : > { %s262_s12 = ssub.s32 %s1517_s21, %s2009_s29  ;;  %p1688_p5 = por %p273_p3, %p272_p2 }
  0x2c   : > { %p41_p7 = scmp.ge.s32.totalorder %s2011_s13, 2  ;;  %p263_p8 = scmp.eq.s32.totalorder %s262_s12, 0 }
  0x2d   : > { %s293_s16 = sadd.s32 1, %s1493_s15  ;;  %p1231_p9 = scmp.lt.s32.totalorder %s1525_s23, 4 }
  0x2e   : > { %s2013_s13 = smov (%p41_p7, %s2011_s13), 0  ;;  %s393_s28 = sand.u32 1, %s1505_s18  }
  0x2f   : > { %1975 = sst [smem:[#allocation20_spill]] %s2013_s13  ;;  %s289_s4 = ssub.s32 %s1521_s22, %s2013_s13 }
  0x30   : > { %s1697_s25 = scalar_select %p263_p8, %s1505_s18, %s265_s11  }
  0x31   : > { %s290_s10 = sor.u32 %s289_s4, %s262_s12  ;;  %s1158_s29 = sshll.u32 %s393_s28, 3 }
  0x32   : > { %1976 = sst [smem:[#allocation21_spill]] %s1697_s25  ;;  %p291_p12 = scmp.eq.s32.totalorder %s290_s10, 0 }
  0x33   : > { %s1159_s2 = sshll.u32 %s1517_s21, 3  ;;  %s1978_s9 = sld [smem:[#allocation32_spill]] }
  0x34   : > { %s1704_s3 = scalar_select %p291_p12, %s1493_s15, %s293_s16  }
  0x35   : > { %s397_s5 = scalar_lea.vmem [#allocation6], %s1158_s29  ;;  %p1223_p13 = pnand %p1231_p9, %p1688_p5 }
  0x36   : > { %1977 = sst [smem:[#allocation22_spill]] %s1704_s3  ;;  %s405_s0 = sshll.u32 %s397_s5, 4  ;;  %s406_s0 = int_to_ptr.vmem [resolvable:$true] %s405_s0 }
  0x37   : > { %s394_s11 = scalar_lea.sflag [#allocation7], %s393_s28  ;;  %414 = sbr.rel (%p1666_p11) target bundleno = 1985 (0x7c1), region = 60 }
  0x39   : > { %s401_s6 = scalar_lea.hbm %s1978_s9, %s1159_s2 }
  0x3a   : > { %s403_s1 = sshll.u32 %s401_s6, 4  ;;  %s404_s1 = int_to_ptr.hbm [resolvable:$true] %s403_s1 }
  0x3b   : > { %1225 = dma.hbm_to_vmem [thread:$0]  (!%p1223_p13), %s404_s1, 128, %s406_s0, %s394_s11  }
  0x3c   : > { %1472 = dma.done.wait (%p1642_p1), [#allocation4], 64  }
  0x3d   : > { %1474 = vsyncadd (%p1642_p1), [#allocation4], 4294967232  ;;  %s421_s2 = sand.u32 1, %s1501_s17  }
  0x3e   : > { %s1720_s4 = sshll.u32 %s421_s2, 3  ;;  %s422_s5 = scalar_lea.sflag [#allocation7], %s421_s2 }
  0x3f   : > { %1476 = dma.done.wait (%p1650_p4), %s422_s5, 128  }
  0x40   : > { %1478 = vsyncadd (%p1650_p4), %s422_s5, 4294967168  ;;  %s1943_s0 = sand.u32 1, %s1489_s14   ;;  %p490_p1 = scmp.lt.s32.totalorder %s1513_s20, 1 }
  0x41   : > { %s1731_s1 = sshll.u32 %s1943_s0, 3  ;;  %p497_p11 = scmp.lt.s32.totalorder %s1509_s19, 1 }
  0x42   : > { %s1735_s7 = scalar_select %p490_p1, %s1513_s20, 1 }
  0x43   : > { %s498_s8 = scalar_select %p497_p11, %s1509_s19, 1 }
  0x44   : > { %s1164_s10 = sshll.u32 %s1735_s7, 3  ;;  %s1979_s28 = sld [smem:[#allocation24_spill]] }
  0x45   : > { %s1980_s24 = sld [smem:[#allocation23_spill]]  ;;  %s1205_s11 = sshll.u32 %s498_s8, 5 }
  0x46   : > { %s1981_s0 = sld [smem:[#allocation28_spill]]  ;;  %s1208_s26 = sshll.u32 %s498_s8, 6 }
  0x47   : > { %s1982_s22 = sld [smem:[#allocation29_spill]]  ;;  %s489_s12 = scalar_lea.vmem [#allocation8], %s1731_s1 }
  0x48   : > { %s1983_s17 = sld [smem:[#allocation30_spill]]  ;;  %p1173_p4 = scmp.ne.s32.totalorder %s1509_s19, 0 }
  0x49   : > { %s1984_s30 = sld [smem:[#allocation31_spill]] }
  0x4a   : > { %s496_s29 = scalar_lea.vmem %s1979_s28, %s1735_s7 }
  0x4b   : > { %s493_s16 = scalar_lea.vmem %s1980_s24, %s1164_s10  ;;  %520 = sbr.rel (%p1173_p4) target bundleno = 82 (0x52), region = 72 }
  0x4c   : > { %s501_s6 = scalar_lea.vmem %s1981_s0, %s1205_s11 }
  0x4d   : > { %s1752_s21 = scalar_lea.vmem %s1982_s22, %s1205_s11 }
  0x4e   : > { %s1757_s3 = scalar_lea.vmem %s1983_s17, %s1205_s11 }
  0x4f   : > { %s1762_s10 = scalar_lea.vmem %s1984_s30, %s1208_s26 }
  0x50   : > { %v521_v0 = vld [vmem:[%s493_s16] sm:$0xff]  ;;  %vm522_vm0 = vcmask 261120  }
  0x51   : > { %523 = vst.msk [vmem:[#allocation2] sm:$0xff] %vm522_vm0, %v521_v0 }
  0x52 PF: > { %v539_v1 = vld [vmem:[%s501_s6 + $0x18] sm:$0xff]  ;;  %v538_v2 = vld [vmem:[%s501_s6 + $0x10] sm:$0xff]  ;;  %v537_v3 = vld [vmem:[%s501_s6 + $0x8] sm:$0xff]  ;;  %vm541_vm1 = vcmask 261120   ;;  %vm579_vm2 = vcmask 1043456   ;;  %s1985_s17 = sld [smem:[#allocation26_spill]] }
  0x53   : > { %557 = vmatpush.msra.mxu0 %v539_v1  ;;  %v536_v4 = vld [vmem:[%s501_s6] sm:$0xff]  ;;  %v534_v6 = vld [vmem:[#allocation3] sm:$0xf]  ;;  %vm566_vm3 = vcmask 31744   ;;  %s1987_s18 = scalar_lea.vmem [#allocation6], %s1720_s4  ;;  %s1528_s22 = smov 96  }
  0x54   : > { %1209 = vmatpush.msk.msra.mxu2 %vm579_vm2, %v534_v6  ;;  %1175 = vmatpush.msk.msra.mxu1 %vm579_vm2, %v534_v6  ;;  %v1778_v8 = vld [vmem:[%s1987_s18] sm:$0xff]  ;;  %s1529_s6 = smov 64   ;;  %s1988_s26 = sld [smem:[#allocation25_spill]]  ;;  %vm616_vm4 = vcmask 64512   ;;  %v1326_v42 = vld [vmem:[%s496_s29] ss:$0 sm:$0xff] }
  0x55   : > { %558 = vmatpush.msra.mxu0 %v538_v2  ;;  %v540_v9 = vperm.slane %v1778_v8, 0  ;;  %v813_v50 = vld [vmem:[%s1752_s21 + $0x18] sm:$0xff]  ;;  %v812_v51 = vld [vmem:[%s1752_s21 + $0x10] sm:$0xff]  ;;  %v811_v53 = vld [vmem:[%s1752_s21 + $0x8] sm:$0xff]  ;;  %v814_v59 = vperm.slane %v1778_v8, 1  ;;  %v1530_v0 = vmov 32.0  }
  0x56   : > { %v810_v54 = vld [vmem:[%s1752_s21] sm:$0xff]  ;;  %vm918_vm9 = vcmask 523264   ;;  %s1990_s0 = sld [smem:[#allocation33_spill]]  ;;  %s1992_s16 = sand.u32 1, %s1489_s14  }
  0x57   : > { %559 = vmatpush.msra.mxu0 %v537_v3  ;;  %s972_s4 = scalar_lea.sflag [#allocation5], %s1992_s16 }
  0x58   : > { %v1766_v5 = vld [vmem:[#allocation2] sm:$0xff]  ;;  %s1986_s25 = smov %s1985_s17  ;;  %v533_v7 = vld [vmem:[%s1985_s17 + $0x18] sm:$0xff] }
  0x59   : > { %560 = vmatpush.msra.mxu0 %v536_v4  ;;  %1179 = vmatmul.msk.f32.vlgmr.msra.gmra.mxu2 %vm566_vm3, %v533_v7  ;;  %v530_v12 = vld [vmem:[%s1986_s25] sm:$0xff]  ;;  %v531_v13 = vld [vmem:[%s1986_s25 + $0x8] sm:$0xff]  ;;  %v532_v14 = vld [vmem:[%s1986_s25 + $0x10] sm:$0xff] }
  0x5a   : > { %1174 = vmatmul.msk.f32.vlgmr.msra.gmra.mxu0 %vm541_vm1, %v1766_v5  ;;  %777 = vmatpush.msrb.mxu1 %v533_v7  ;;  %v526_v15 = vld [vmem:[%s1988_s26] sm:$0xff]  ;;  %v527_v17 = vld [vmem:[%s1988_s26 + $0x8] sm:$0xff]  ;;  %v528_v19 = vld [vmem:[%s1988_s26 + $0x10] sm:$0xff] }
  0x5b   : > { %1176 = vmatmul.msk.f32.vlgmr.msra.gmra.mxu1 %vm566_vm3, %v530_v12  ;;  %v529_v20 = vld [vmem:[%s1988_s26 + $0x18] sm:$0xff] }
  0x5c   : > { %778 = vmatpush.msrb.mxu1 %v532_v14  ;;  %s1419_s28 = scalar_lea.hbm %s1990_s0, 32 }
  0x5e   : > { %779 = vmatpush.msrb.mxu1 %v531_v13 }
  0x60   : > { %780 = vmatpush.msrb.mxu1 %v530_v12 }
  0x63   : > { %1177 = vmatmul.msk.f32.gmra.mxu1 %vm566_vm3, %v531_v13  ;;  %v875_v13 = vld [vmem:[%s1757_s3 + $0x18] sm:$0xff] }
  0x6b   : > { %1178 = vmatmul.msk.f32.gmra.mxu1 %vm566_vm3, %v532_v14  ;;  %v874_v14 = vld [vmem:[%s1757_s3 + $0x10] sm:$0xff] }
  0xd7   : > { %v562_v10 = vpop.f32.mrf.mxu0 }
  0xd8   : > { %v563_v11 = vadd.f32 %v562_v10, %v540_v9  ;;  %v600_v23 = vpop.f32.mrf.mxu1 }
  0xda   : > { %613 = vrot.lane.b32.xlu0 %v563_v11, %s1528_s22  ;;  %v565_v38 = vmul.f32 0.35355338, %v563_v11 }
  0xdc   : > { %v609_v21 = vpop.f32.mrf.mxu2 }
  0xe0   : > { %v603_v26 = vpop.f32.mrf.mxu1 }
  0xe2   : > { %662 = vrot.lane.b32.xlu0 %v563_v11, %s1529_s6 }
  0xe8   : > { %v606_v32 = vpop.f32.mrf.mxu1 }
 0x14c   : > { %v614_v16 = vpop.permute.xlu0 %613 }
 0x14d   : > { %644 = vmatpush.msrb.mxu2 %v614_v16  ;;  %v872_v16 = vld [vmem:[%s1757_s3] sm:$0xff] }
 0x14e   : > { %1180 = vmatmul.msk.f32.vlgmr.msrb.gmra.mxu2 %vm616_vm4, %v526_v15 }
 0x14f   : > { %1195 = vmatpush.msk.msra.mxu2 %vm579_vm2, %v534_v6 }
 0x154   : > { %v663_v18 = vpop.permute.xlu0 %662 }
 0x155   : > { %680 = vmatpush.msra.mxu3 %v663_v18 }
 0x156   : > { %1181 = vmatmul.msk.f32.gmra.mxu2 %vm616_vm4, %v527_v17  ;;  %1184 = vmatmul.msk.f32.vlgmr.msra.gmra.mxu3 %vm616_vm4, %v526_v15  ;;  %v873_v15 = vld [vmem:[%s1757_s3 + $0x8] sm:$0xff]  ;;  %s1201_s3 = sshll.u32 %s1509_s19, 1 }
 0x157   : > { %830 = vmatpush.msrb.mxu3 %v813_v50  ;;  %s982_s21 = sadd.s32 %s1513_s20, %s1201_s3  ;;  %s986_s20 = sshll.u32 %s489_s12, 4  ;;  %s987_s20 = int_to_ptr.vmem [resolvable:$true] %s986_s20 }
 0x158   : > { %s1202_s7 = sshll.u32 %s982_s21, 3 }
 0x159   : > { %831 = vmatpush.msrb.mxu3 %v812_v51  ;;  %s984_s8 = scalar_lea.hbm %s1990_s0, %s1202_s7 }
 0x15a   : > { %s988_s24 = sshll.u32 %s984_s8, 4  ;;  %s989_s24 = int_to_ptr.hbm [resolvable:$true] %s988_s24 }
 0x15b   : > { %832 = vmatpush.msrb.mxu3 %v811_v53  ;;  %s1413_s11 = sshra.s32 %s989_s24, 4  ;;  %s1414_s11 = int_to_ptr.hbm [resolvable:$true] %s1413_s11 }
 0x15c   : > { %s1415_s2 = scalar_lea.hbm %s1414_s11, 8  ;;  %p1420_p5 = scmp.lt.s32.totalorder %s1414_s11, %s1990_s0 }
 0x15d   : > { %833 = vmatpush.msrb.mxu3 %v810_v54  ;;  %p1416_p0 = scmp.ne.s32.totalorder %s1414_s11, %s1415_s2  ;;  %p1421_p7 = scmp.lt.s32.totalorder %s1419_s28, %s1415_s2 }
 0x15e   : > { %1182 = vmatmul.msk.f32.gmra.mxu2 %vm616_vm4, %v528_v19  ;;  %1185 = vmatmul.msk.f32.gmra.mxu3 %vm616_vm4, %v527_v17 }
 0x15f   : > { %p1417_p2 = pnand %p1416_p0, %p1656_p6  ;;  %p1422_p8 = por %p1421_p7, %p1420_p5 }
 0x161   : > { %p1418_p3 = pneg %p1417_p2 }
 0x163   : > { %p1423_p9 = pnand %p1422_p8, %p1418_p3 }
 0x166   : > { %1183 = vmatmul.msk.f32.gmra.mxu2 %vm616_vm4, %v529_v20  ;;  %1186 = vmatmul.msk.f32.gmra.mxu3 %vm616_vm4, %v528_v19 }
 0x16e   : > { %1187 = vmatmul.msk.f32.gmra.mxu3 %vm616_vm4, %v529_v20 }
 0x1d1   : > { %v646_v22 = vpop.f32.mrf.mxu2 }
 0x1d2   : > { %v658_v36 = vmul.f32 %v646_v22, %v600_v23 }
 0x1d9   : > { %v649_v24 = vpop.f32.mrf.mxu2  ;;  %v682_v25 = vpop.f32.mrf.mxu3 }
 0x1da   : > { %v659_v34 = vmul.f32 %v649_v24, %v603_v26  ;;  %v694_v41 = vmul.f32 %v682_v25, %v600_v23 }
 0x1e1   : > { %v652_v27 = vpop.f32.mrf.mxu2  ;;  %v685_v28 = vpop.f32.mrf.mxu3 }
 0x1e2   : > { %v660_v33 = vmul.f32 %v652_v27, %v606_v32  ;;  %v695_v40 = vmul.f32 %v685_v28, %v603_v26  ;;  %v868_v26 = vperm.slane %v1778_v8, 2 }
 0x1e9   : > { %v655_v29 = vpop.f32.mrf.mxu2  ;;  %v688_v31 = vpop.f32.mrf.mxu3 }
 0x1ea   : > { %v661_v30 = vmul.f32 %v655_v29, %v609_v21  ;;  %v696_v39 = vmul.f32 %v688_v31, %v606_v32  ;;  %v870_v29 = vperm.slane %v1778_v8, 3  ;;  %v916_v32 = vld [vmem:[%s1762_s10 + $0x38] sm:$0xff] }
 0x1eb   : > { %930 = vmatpush.msra.mxu1 %v916_v32 }
 0x1ec   : > { %1188 = vmatpush.xpose.msk.msrb.mxu0 %vm541_vm1, %v661_v30 }
 0x1f0   : > { %1189 = vmatpush.xpose.msk.msrb.mxu0 %vm541_vm1, %v660_v33  ;;  %v915_v33 = vld [vmem:[%s1762_s10 + $0x30] sm:$0xff] }
 0x1f1   : > { %v691_v35 = vpop.f32.mrf.mxu3  ;;  %931 = vmatpush.msra.mxu1 %v915_v33 }
 0x1f2   : > { %v697_v37 = vmul.f32 %v691_v35, %v609_v21  ;;  %v913_v35 = vld [vmem:[%s1762_s10 + $0x20] sm:$0xff] }
 0x1f4   : > { %1190 = vmatpush.xpose.msk.msrb.mxu0 %vm541_vm1, %v659_v34  ;;  %v914_v34 = vld [vmem:[%s1762_s10 + $0x28] sm:$0xff] }
 0x1f5   : > { %932 = vmatpush.msra.mxu1 %v914_v34 }
 0x1f7   : > { %933 = vmatpush.msra.mxu1 %v913_v35 }
 0x1f8   : > { %1191 = vmatpush.xpose.msk.msrb.mxu0 %vm541_vm1, %v658_v36  ;;  %v912_v36 = vld [vmem:[%s1762_s10 + $0x18] sm:$0xff] }
 0x1f9   : > { %934 = vmatpush.msra.mxu1 %v912_v36 }
 0x1fb   : > { %1192 = vmatmul.msk.f32.vlgmr.msrb.gmra.mxu0 %vm541_vm1, %v565_v38  ;;  %v910_v38 = vld [vmem:[%s1762_s10 + $0x8] sm:$0xff] }
 0x1fc   : > { %757 = vmatpush.msra.mxu0 %v697_v37  ;;  %v911_v37 = vld [vmem:[%s1762_s10 + $0x10] sm:$0xff] }
 0x1fd   : > { %935 = vmatpush.msra.mxu1 %v911_v37 }
 0x1fe   : > { %758 = vmatpush.msra.mxu0 %v696_v39  ;;  %v909_v39 = vld [vmem:[%s1762_s10] sm:$0xff] }
 0x1ff   : > { %936 = vmatpush.msra.mxu1 %v910_v38 }
 0x200   : > { %759 = vmatpush.msra.mxu0 %v695_v40  ;;  %v876_v40 = vperm.slane %v1778_v8, 4 }
 0x201   : > { %937 = vmatpush.msra.mxu1 %v909_v39 }
 0x202   : > { %760 = vmatpush.msra.mxu0 %v694_v41 }
 0x204   : > { %892 = vmatpush.msrb.mxu0 %v875_v13 }
 0x206   : > { %893 = vmatpush.msrb.mxu0 %v874_v14 }
 0x208   : > { %894 = vmatpush.msrb.mxu0 %v873_v15 }
 0x20a   : > { %895 = vmatpush.msrb.mxu0 %v872_v16 }
 0x278   : > { %v733_v43 = vpop.f32.mrf.mxu0 }
 0x279   : > { %v734_v44 = vadd.f32 %v1326_v42, %v733_v43 }
 0x27b   : > { %v736_v45 = vsel %vm541_vm1, %v734_v44, -inf }
 0x27c   : > { %737 = vmax.xlane.f32.xlu1 %v736_v45 }
 0x2ef   : > { %v738_v46 = vpop.xlane.xlu1 %737 }
 0x2f0   : > { %v739_v47 = vsub.f32 %v734_v44, %v738_v46 }
 0x2f2   : > { %v740_v48 = vmul.f32 1.442695, %v739_v47 }
 0x2f4   : > { %1327 = vpow2.f32 %v740_v48 }
 0x2fa   : > { %v1328_v49 = vpop.eup %1327 }
 0x2fb   : > { %1193 = vmatmul.msk.f32.vlgmr.msra.gmra.mxu0 %vm541_vm1, %v1328_v49  ;;  %1194 = vmatmul.msk.f32.vlgmr.msrb.gmra.mxu1 %vm541_vm1, %v1328_v49 }
 0x378   : > { %v782_v52 = vpop.f32.mrf.mxu1  ;;  %v762_v57 = vpop.f32.mrf.mxu0 }
 0x379   : > { %1196 = vmatmul.msk.f32.vlgmr.msra.gmra.mxu2 %vm566_vm3, %v782_v52  ;;  %v917_v52 = vperm.slane %v1778_v8, 5 }
 0x3fc   : > { %v805_v55 = vpop.f32.mrf.mxu2 }
 0x3fd   : > { %1329 = vrcp.f32 %v805_v55 }
 0x3fe   : > { %1331 = vrcp.f32 %v1530_v0 }
 0x403   : > { %v1330_v56 = vpop.eup %1329 }
 0x404   : > { %v809_v58 = vmul.f32 %v1330_v56, %v762_v57  ;;  %v1332_v1 = vpop.eup %1331 }
 0x405   : > { %v843_v2 = vmul.f32 32.0, %v1332_v1  ;;  %vm847_vm5 = vweird.f32 %v1332_v1 }
 0x406   : > { %1197 = vmatmul.msk.f32.vlgmr.msrb.gmra.mxu3 %vm541_vm1, %v809_v58 }
 0x407   : > { %v844_v3 = vsub.f32 1.0, %v843_v2 }
 0x409   : > { %v845_v4 = vmul.f32 %v1332_v1, %v844_v3 }
 0x40b   : > { %v846_v6 = vadd.f32 %v1332_v1, %v845_v4 }
 0x40d   : > { %v1836_v7 = vsel %vm847_vm5, %v1332_v1, %v846_v6 }
 0x489   : > { %v835_v60 = vpop.f32.mrf.mxu3 }
 0x48a   : > { %v836_v61 = vadd.f32 %v835_v60, %v814_v59 }
 0x48c   : > { %v838_v62 = vadd.f32 %v836_v61, %v1766_v5 }
 0x48e   : > { %v839_v63 = vsel %vm541_vm1, %v838_v62, 0.0 }
 0x48f   : > { %840 = vadd.xlane.f32.xlu1 %v839_v63 }
 0x502   : > { %v841_v9 = vpop.xlane.xlu1 %840 }
 0x503   : > { %v849_v5 = vmul.f32 %v1836_v7, %v841_v9 }
 0x505   : > { %v850_v10 = vsub.f32 %v838_v62, %v849_v5  ;;  %v965_v5 = vperm.slane %v1778_v8, 6 }
 0x507   : > { %v851_v11 = vmul.f32 %v850_v10, %v850_v10 }
 0x509   : > { %v852_v12 = vsel %vm541_vm1, %v851_v11, 0.0  ;;  %v967_v11 = vperm.slane %v1778_v8, 7 }
 0x50a   : > { %853 = vadd.xlane.f32.xlu2 %v852_v12 }
 0x57d   : > { %v854_v17 = vpop.xlane.xlu2 %853 }
 0x57e   : > { %v855_v18 = vmul.f32 %v854_v17, %v1836_v7 }
 0x580   : > { %v856_v19 = vadd.f32 1e-12, %v855_v18 }
 0x582   : > { %1333 = vrsqrt.f32 %v856_v19  ;;  %vm863_vm7 = vweird.f32 %v856_v19 }
 0x588   : > { %v1334_v20 = vpop.eup %1333 }
 0x589   : > { %v858_v21 = vmul.f32 %v1334_v20, %v856_v19  ;;  %vm864_vm6 = vweird.f32 %v1334_v20 }
 0x58a   : > { %vm865_vm8 = vmor %vm863_vm7, %vm864_vm6 }
 0x58b   : > { %v859_v22 = vmul.f32 %v1334_v20, %v858_v21 }
 0x58d   : > { %v860_v23 = vmul.f32 0.5, %v859_v22 }
 0x58f   : > { %v861_v24 = vsub.f32 1.5, %v860_v23 }
 0x591   : > { %v862_v25 = vmul.f32 %v1334_v20, %v861_v24 }
 0x593   : > { %v866_v27 = vsel %vm865_vm8, %v1334_v20, %v862_v25 }
 0x594   : > { %v867_v28 = vmul.f32 %v866_v27, %v850_v10 }
 0x596   : > { %v869_v30 = vmul.f32 %v868_v26, %v867_v28 }
 0x598   : > { %v871_v31 = vadd.f32 %v870_v29, %v869_v30 }
 0x59a   : > { %1198 = vmatmul.msk.f32.vlgmr.msrb.gmra.mxu0 %vm541_vm1, %v871_v31 }
 0x617   : > { %v897_v41 = vpop.f32.mrf.mxu0 }
 0x618   : > { %v898_v42 = vadd.f32 %v897_v41, %v876_v40 }
 0x61a   : > { %v901_v43 = vmul.f32 0.044715, %v898_v42  ;;  %v900_v49 = vmul.f32 0.5, %v898_v42 }
 0x61c   : > { %v902_v44 = vmul.f32 %v901_v43, %v898_v42 }
 0x61e   : > { %v903_v45 = vmul.f32 %v902_v44, %v898_v42 }
 0x620   : > { %v904_v46 = vadd.f32 %v903_v45, %v898_v42 }
 0x622   : > { %v905_v47 = vmul.f32 0.7978846, %v904_v46 }
 0x624   : > { %1335 = vtanh.f32 %v905_v47 }
 0x62a   : > { %v1336_v48 = vpop.eup %1335 }
 0x62b   : > { %v907_v50 = vadd.f32 1.0, %v1336_v48 }
 0x62d   : > { %v908_v51 = vmul.f32 %v907_v50, %v900_v49 }
 0x62f   : > { %1199 = vmatmul.msk.f32.vlgmr.msra.gmra.mxu1 %vm918_vm9, %v908_v51 }
 0x6ac   : > { %v939_v53 = vpop.f32.mrf.mxu1 }
 0x6ad   : > { %v940_v54 = vadd.f32 %v939_v53, %v917_v52 }
 0x6af   : > { %v942_v55 = vadd.f32 %v940_v54, %v871_v31 }
 0x6b1   : > { %v943_v56 = vsel %vm541_vm1, %v942_v55, 0.0 }
 0x6b2   : > { %944 = vadd.xlane.f32.xlu2 %v943_v56 }
 0x725   : > { %v945_v57 = vpop.xlane.xlu2 %944 }
 0x726   : > { %v946_v58 = vmul.f32 %v945_v57, %v1836_v7 }
 0x728   : > { %v947_v59 = vsub.f32 %v942_v55, %v946_v58 }
 0x72a   : > { %v948_v60 = vmul.f32 %v947_v59, %v947_v59 }
 0x72c   : > { %v949_v61 = vsel %vm541_vm1, %v948_v60, 0.0 }
 0x72d   : > { %950 = vadd.xlane.f32.xlu0 %v949_v61 }
 0x7a0   : > { %v951_v62 = vpop.xlane.xlu0 %950 }
 0x7a1   : > { %v952_v63 = vmul.f32 %v951_v62, %v1836_v7 }
 0x7a3   : > { %v953_v0 = vadd.f32 1e-12, %v952_v63 }
 0x7a5   : > { %1337 = vrsqrt.f32 %v953_v0  ;;  %vm960_vm11 = vweird.f32 %v953_v0 }
 0x7ab   : > { %v1338_v1 = vpop.eup %1337 }
 0x7ac   : > { %v955_v2 = vmul.f32 %v1338_v1, %v953_v0  ;;  %vm961_vm10 = vweird.f32 %v1338_v1 }
 0x7ad   : > { %vm962_vm12 = vmor %vm960_vm11, %vm961_vm10 }
 0x7ae   : > { %v956_v3 = vmul.f32 %v1338_v1, %v955_v2 }
 0x7b0   : > { %v957_v4 = vmul.f32 0.5, %v956_v3 }
 0x7b2   : > { %v958_v6 = vsub.f32 1.5, %v957_v4 }
 0x7b4   : > { %v959_v9 = vmul.f32 %v1338_v1, %v958_v6 }
 0x7b6   : > { %v963_v7 = vsel %vm962_vm12, %v1338_v1, %v959_v9 }
 0x7b7   : > { %v964_v10 = vmul.f32 %v963_v7, %v947_v59 }
 0x7b9   : > { %v966_v12 = vmul.f32 %v965_v5, %v964_v10 }
 0x7bb   : > { %v968_v13 = vadd.f32 %v967_v11, %v966_v12 }
 0x7bd   : > { %969 = vst.msk [vmem:[#allocation2] sm:$0xff] %vm541_vm1, %v968_v13 }
 0x7be   : > { %970 = vst.msk [vmem:[%s489_s12] sm:$0xff] %vm541_vm1, %v968_v13 }
 0x7bf   : > { %1426 = shalt.err (!%p1423_p9)
}
 0x7c0   : > { %1216 = dma.vmem_to_hbm [thread:$0]  (%p1656_p6), %s987_s20, 128, %s989_s24, %s972_s4  }
 0x7c1 PF: > { %s1993_s1 = sld [smem:[#allocation12_spill]]  ;;  %p1233_p12 = scmp.ge.s32.totalorder %s1525_s23, 2 }
 0x7c3   : > { %p1227_p13 = pnand %p1233_p12, %p1662_p10 }
 0x7c5   : > { %p1228_p1 = pneg %p1227_p13 }
 0x7c7   : > { %s1000_s13 = sand.u32 1, %s1993_s1  }
 0x7c8   : > { %s1001_s17 = scalar_lea.sflag [#allocation5], %s1000_s13 }
 0x7c9   : > { %1480 = dma.done.wait (%p1228_p1), %s1001_s17, 128  }
 0x7ca   : > { %1482 = vsyncadd (%p1228_p1), %s1001_s17, 4294967168  ;;  %s27_s23 = sadd.s32 1, %s1525_s23   ;;  %s1995_s18 = sld [smem:[#allocation22_spill]] }
 0x7cb   : > { %p24_p11 = scmp.ge.s32.totalorder %s27_s23, 6   ;;  %s1996_s16 = sld [smem:[#allocation13_spill]] }
 0x7cc   : > { %s1997_s17 = sld [smem:[#allocation14_spill]]  ;;  %s2003_s13 = smov %s1489_s14 }
 0x7cd   : > { %s1998_s22 = sld [smem:[#allocation21_spill]]  ;;  %s2004_s14 = smov %s1493_s15 }
 0x7ce   : > { %s1999_s19 = sld [smem:[#allocation15_spill]] }
 0x7cf   : > { %s2000_s20 = sld [smem:[#allocation16_spill]] }
 0x7d0   : > { %s2001_s21 = sld [smem:[#allocation19_spill]]  ;;  %s2005_s15 = smov %s1995_s18 }
 0x7d1   : > { %s2002_s6 = sld [smem:[#allocation20_spill]] }
 0x7d3   : > { %s2006_s18 = smov %s1998_s22  ;;  %26 = sbr.rel (!%p24_p11) target bundleno = 22 (0x16), region = 132 }
 0x7d7   : > { %s2007_s22 = smov %s2002_s6 }
 0x7d8   :  { %1007 = vsyncpa [#allocation4], 1 }
 0x7d9   :  { %1009 = vsyncpa [#allocation4 + $0x1], 1 }
 0x7da   :  { %1010 = vsyncpa [#allocation7], 1 }
 0x7db   :  { %1012 = vsyncpa [#allocation7 + $0x1], 1 }
 0x7dc   :  { %1013 = vsyncpa [#allocation5], 1 }
 0x7dd   :  { %1015 = vsyncpa [#allocation5 + $0x1], 1 }

</bundles_post_ra>
